<compile_context>
chip_gen: v5e
topology: v5e:2x2
jax: 0.10.0
libtpu: 0.0.40
codegen_flags: <defaults>
</compile_context>

<pallas_src>
import copy
import functools

import jax
import jax.numpy as jnp
from jax import lax
from jax.experimental import pallas as pl
from jax.experimental.pallas import tpu as pltpu


_WIDE_BLOCK_BYTES = 4 * 1024 * 1024   # target HBM->VMEM block size, wide kernel
_TALL_BLOCK_BYTES = 4 * 1024 * 1024   # target HBM->VMEM block size, tall kernel
_MAX_BATCH_BLOCK = 2048               # cap on samples per block (wide kernel)


def _round_down(value, multiple):
    return (value // multiple) * multiple


# ----------------------------------------------------------------------------
# Wide kernel: (batch_block, chunk) blocks of the flat (B, N) view.
# ----------------------------------------------------------------------------
def _wide_kernel(x_ref, o_ref, *, n_lanes, chunk, num_chunks, tail_full,
                 tail_rem, unroll):
    """grid = (batch_blocks, chunks); o_ref is a lane-dense (bb, 128) f32
    accumulator resident across the chunk axis."""
    k = pl.program_id(1)
    w_per_chunk = chunk // 128

    @pl.when(k == 0)
    def _():
        o_ref[...] = jnp.zeros_like(o_ref)

    def add_window(off):
        # 128-lane-aligned slice -> full-vreg loads, pure VPU add.
        o_ref[...] += x_ref[:, pl.ds(off, 128)].astype(jnp.float32)

    def add_windows(count):
        if count <= 0:
            return
        if count <= 16:
            for w in range(count):             # static offsets, fully unrolled
                add_window(w * 128)
        else:
            def body(w, carry):
                add_window(pl.multiple_of(w * 128, 128))
                return carry
            lax.fori_loop(0, count, body, 0, unroll=unroll)

    if n_lanes % chunk == 0:
        # Every chunk consists of full, in-bounds windows: no masking at all.
        add_windows(w_per_chunk)
    else:
        last = num_chunks - 1
        if num_chunks > 1:
            @pl.when(k != last)
            def _():
                add_windows(w_per_chunk)       # steady state: mask-free

        @pl.when(k == last)
        def _():
            add_windows(tail_full)             # full windows of the last chunk
            if tail_rem > 0:                   # partial 128-lane tail window
                lane = lax.broadcasted_iota(jnp.int32, o_ref.shape, 1)
                win = x_ref[:, pl.ds(tail_full * 128, 128)].astype(jnp.float32)
                o_ref[...] += jnp.where(lane < tail_rem, win, 0.0)


def _sum_wide(xf):
    """Per-sample sum for xf of shape (B, N), any N >= 128."""
    b, n = xf.shape
    itemsize = xf.dtype.itemsize
    chunk_pad = pl.cdiv(n, 128) * 128
    bb_min = b if b < 8 else 8

    if bb_min * chunk_pad * itemsize <= _WIDE_BLOCK_BYTES:
        # Small/medium samples: one chunk spans the whole (128-padded) feature
        # dim; pack as many samples per block as fit the ~4 MiB budget.
        chunk = chunk_pad
        bb = min(_WIDE_BLOCK_BYTES // (chunk * itemsize), _MAX_BATCH_BLOCK)
        if bb >= b:
            bb = b                              # full batch dim (always legal)
        else:
            bb = max(8, _round_down(bb, 8))     # multiple of 8 (sublane rule)
    else:
        # Wide samples (only reached for N % 128 != 0): tile the feature dim.
        bb = b if b < 8 else min(64, _round_down(b, 8))
        chunk = max(128, _round_down(_WIDE_BLOCK_BYTES // (bb * itemsize), 128))

    num_bblocks = pl.cdiv(b, bb)
    num_chunks = pl.cdiv(n, chunk)
    w_per_chunk = chunk // 128
    full_windows = n // 128
    tail_full = full_windows - (num_chunks - 1) * w_per_chunk
    tail_rem = n - full_windows * 128
    unroll = max(1, min(8, w_per_chunk))

    kernel = functools.partial(
        _wide_kernel, n_lanes=n, chunk=chunk, num_chunks=num_chunks,
        tail_full=tail_full, tail_rem=tail_rem, unroll=unroll)

    out = pl.pallas_call(
        kernel,
        out_shape=jax.ShapeDtypeStruct((b, 128), jnp.float32),
        grid_spec=pltpu.PrefetchScalarGridSpec(
            num_scalar_prefetch=0,
            grid=(num_bblocks, num_chunks),
            in_specs=[pl.BlockSpec((bb, chunk), lambda i, k: (i, k))],
            out_specs=pl.BlockSpec((bb, 128), lambda i, k: (i, 0)),
        ),
        compiler_params=pltpu.CompilerParams(
            dimension_semantics=("parallel", "arbitrary")),
        cost_estimate=pl.CostEstimate(
            flops=b * n, transcendentals=0,
            bytes_accessed=b * n * itemsize + b * 128 * 4),
    )(xf)
    # Tiny final 128-lane reduce per sample, done once by XLA.
    return jnp.sum(out, axis=1)


# ----------------------------------------------------------------------------
# Tall kernel: per-sample streaming of (rows_per_block, 128) slabs.
# ----------------------------------------------------------------------------
def _tall_kernel(x_ref, o_ref, acc_ref, *, rows, rpb, splits, kps, num_full):
    """grid = (B * splits, row_blocks_per_split); acc_ref is a (64, 128) f32
    partial updated with pure VPU adds; one cross-sublane reduce per sample."""
    g = pl.program_id(0)   # sample * splits + split
    k = pl.program_id(1)   # row block within this split

    @pl.when(k == 0)
    def _():
        acc_ref[...] = jnp.zeros_like(acc_ref)

    groups = rpb // 64

    def accumulate(mask_rb):
        def add_group(off):
            v = x_ref[pl.ds(off, 64), :].astype(jnp.float32)
            if mask_rb is not None:
                ridx = (mask_rb * rpb + off
                        + lax.broadcasted_iota(jnp.int32, (64, 128), 0))
                v = jnp.where(ridx < rows, v, 0.0)
            acc_ref[...] += v

        if groups <= 8:
            for i in range(groups):
                add_group(i * 64)
        else:
            def body(i, carry):
                add_group(pl.multiple_of(i * 64, 64))
                return carry
            lax.fori_loop(0, groups, body, 0, unroll=4)

    if rows % rpb == 0 and splits * kps == num_full:
        accumulate(None)                       # every block full & in bounds
    else:
        rb = k if splits == 1 else (g % splits) * kps + k

        @pl.when(rb < num_full)
        def _():
            accumulate(None)                   # mask-free steady state

        @pl.when(rb >= num_full)
        def _():
            accumulate(rb)                     # partial / fully-OOB tail block

    @pl.when(k == pl.num_programs(1) - 1)
    def _():
        o_ref[...] = jnp.sum(acc_ref[...], axis=0, keepdims=True)


def _sum_tall(xf):
    """Per-sample sum for xf of shape (B, N), N % 128 == 0, large N."""
    b, n = xf.shape
    itemsize = xf.dtype.itemsize
    rows = n // 128
    x3 = xf.reshape(b, rows, 128)              # free row-major reshape

    # dtype-aware ~4 MiB row blocks (multiple of 64 rows).
    cap_rows = max(64, _round_down(_TALL_BLOCK_BYTES // (128 * itemsize), 64))
    rpb = max(64, min(cap_rows, _round_down(rows, 64)))
    nblocks = pl.cdiv(rows, rpb)
    num_full = rows // rpb
    # With B == 1, split the row range 2-way so both v7x TensorCores stream.
    splits = 2 if (b == 1 and nblocks >= 2) else 1
    kps = pl.cdiv(nblocks, splits)

    if splits == 1:
        x_index_map = lambda g, k: (g, k, 0)
    else:
        def x_index_map(g, k):
            rb = jnp.minimum((g % splits) * kps + k, nblocks - 1)
            return (g // splits, rb, 0)

    kernel = functools.partial(
        _tall_kernel, rows=rows, rpb=rpb, splits=splits, kps=kps,
        num_full=num_full)

    out = pl.pallas_call(
        kernel,
        out_shape=jax.ShapeDtypeStruct((b * splits, 128), jnp.float32),
        grid_spec=pltpu.PrefetchScalarGridSpec(
            num_scalar_prefetch=0,
            grid=(b * splits, kps),
            in_specs=[pl.BlockSpec((None, rpb, 128), x_index_map)],
            out_specs=pl.BlockSpec((1, 128), lambda g, k: (g, 0)),
            scratch_shapes=[pltpu.VMEM((64, 128), jnp.float32)],
        ),
        compiler_params=pltpu.CompilerParams(
            dimension_semantics=("parallel", "arbitrary")),
        cost_estimate=pl.CostEstimate(
            flops=b * n, transcendentals=0,
            bytes_accessed=b * n * itemsize + b * splits * 128 * 4),
    )(x3)
    return jnp.sum(out.reshape(b, splits * 128), axis=1)


# ----------------------------------------------------------------------------
# Dispatch wrapper.
# ----------------------------------------------------------------------------
@jax.jit
def sum_density(x):
    """Pallas equivalent of torch.sum(x, dim=list(range(1, x.dim())))."""
    if x.ndim <= 1:
        return x                               # no non-batch axes to reduce
    b = x.shape[0]
    xf = x.reshape(b, -1)                      # flatten non-batch axes (free)
    n = xf.shape[1]
    if b == 0 or n == 0:
        return jnp.zeros((b,), dtype=x.dtype)
    if n < 128:
        # Fewer than one vreg of lanes per sample: a kernel is pointless.
        return jnp.sum(xf.astype(jnp.float32), axis=1).astype(x.dtype)
    itemsize = xf.dtype.itemsize
    if n % 128 == 0 and 8 * n * itemsize > _WIDE_BLOCK_BYTES:
        res = _sum_tall(xf)                    # big aligned samples: stream
    else:
        res = _sum_wide(xf)                    # small and/or unaligned samples
    return res.astype(x.dtype)


class ModulePallas:
    """JAX/Pallas mirror of the PyTorch `Module_` prototype class."""

    _propagate_density = False

    def __init__(self, label=None):
        self.label = label

    def sum_density(self, x):
        if ModulePallas._propagate_density:
            return x                           # identity: no reduction
        return sum_density(x)

    def forward(self, x, log0=0):
        # TODO(synk): `forward` is abstract (`pass`) in the reference prototype;
        # concrete subclasses supply the actual transformation.
        return None

    def backward(self, x, log0=0):
        # TODO(synk): abstract in the reference prototype.
        return None

    def transfer(self, **kwargs):
        return copy.deepcopy(self)

    @staticmethod
    def _set_propagate_density(propagate_density):
        ModulePallas._propagate_density = propagate_density


if __name__ == "__main__":
    key = jax.random.PRNGKey(0)
    k1, k2, k3, k4 = jax.random.split(key, 4)

    mod = ModulePallas(label="prototype")

    # 1) Small 4-D input (wide kernel, single aligned chunk, batch-blocked).
    x1 = jax.random.normal(k1, (2, 4, 16, 16), dtype=jnp.float32)
    out1 = jax.block_until_ready(mod.sum_density(x1))
    ref1 = jnp.sum(x1, axis=(1, 2, 3))
    assert out1.shape == (2,), out1.shape
    assert jnp.allclose(out1, ref1, rtol=1e-4, atol=1e-3), (out1, ref1)

    # 2) Feature count not a multiple of 128 (wide kernel, masked tail window).
    x2 = jax.random.normal(k2, (8, 3, 10, 10), dtype=jnp.float32)   # N = 300
    out2 = jax.block_until_ready(mod.sum_density(x2))
    ref2 = jnp.sum(x2, axis=(1, 2, 3))
    assert jnp.allclose(out2, ref2, rtol=1e-4, atol=1e-3), (out2, ref2)

    # 3) Larger per-sample slab -> tall streaming kernel (single row block).
    x3 = jax.random.normal(k3, (2, 8, 128, 144), dtype=jnp.float32)
    out3 = jax.block_until_ready(mod.sum_density(x3))
    ref3 = jnp.sum(x3, axis=(1, 2, 3))
    assert jnp.allclose(out3, ref3, rtol=2e-3, atol=0.25), (out3, ref3)

    # 4) Batch of one with several row blocks -> tall kernel with the 2-way
    #    row split (keeps both v7x TensorCores busy) and a masked tail block.
    x4 = jax.random.normal(k4, (1, 2080, 128), dtype=jnp.float32)
    out4 = jax.block_until_ready(mod.sum_density(x4))
    ref4 = jnp.sum(x4, axis=(1, 2))
    assert jnp.allclose(out4, ref4, rtol=2e-3, atol=0.25), (out4, ref4)

    # propagate_density=True -> identity path (no kernel).
    ModulePallas._set_propagate_density(True)
    ident = mod.sum_density(x1)
    assert ident.shape == x1.shape
    ModulePallas._set_propagate_density(False)

    print("KERNEL_OK")
</pallas_src>

<mosaic_0001>
module attributes {stable_mosaic.version = 11 : i64} {
  func.func @_wide_kernel(%arg0: i32, %arg1: i32, %arg2: memref<2x1024xf32, #tpu.memory_space<vmem>>, %arg3: memref<2x128xf32, #tpu.memory_space<vmem>>) attributes {dimension_semantics = [#tpu.dimension_semantics<parallel>, #tpu.dimension_semantics<arbitrary>], iteration_bounds = array<i64: 1, 1>, scalar_prefetch = 0 : i64, scratch_operands = 0 : i64, tpu.core_type = #tpu.core_type<tc>, window_params = [{transform_indices = @transform_0, window_bounds = array<i64: 2, 1024>}, {transform_indices = @transform_1, window_bounds = array<i64: 2, 128>}]} {
    %c0_i32 = arith.constant 0 : i32
    %0 = arith.cmpi eq, %arg1, %c0_i32 : i32
    %1 = arith.extui %0 : i1 to i32
    %c0_i32_0 = arith.constant 0 : i32
    %2 = arith.cmpi ne, %1, %c0_i32_0 : i32
    scf.if %2 {
      %cst = arith.constant 0.000000e+00 : f32
      %35 = vector.broadcast %cst : f32 to vector<2x128xf32>
      %c0_41 = arith.constant 0 : index
      %c0_42 = arith.constant 0 : index
      %36 = vector.load %arg3[%c0_41, %c0_42] : memref<2x128xf32, #tpu.memory_space<vmem>>, vector<2x128xf32>
      tpu.vector_store %arg3[%c0_41, %c0_42], %35 {strides = array<i32>} : memref<2x128xf32, #tpu.memory_space<vmem>>, vector<2x128xf32>,
    } else {
    }
    %c0 = arith.constant 0 : index
    %c0_1 = arith.constant 0 : index
    %3 = vector.load %arg3[%c0, %c0_1] : memref<2x128xf32, #tpu.memory_space<vmem>>, vector<2x128xf32>
    %c0_2 = arith.constant 0 : index
    %c0_3 = arith.constant 0 : index
    %4 = vector.load %arg2[%c0_2, %c0_3] : memref<2x1024xf32, #tpu.memory_space<vmem>>, vector<2x128xf32>
    %5 = arith.addf %3, %4 : vector<2x128xf32>
    %c0_4 = arith.constant 0 : index
    %c0_5 = arith.constant 0 : index
    %6 = vector.load %arg3[%c0_4, %c0_5] : memref<2x128xf32, #tpu.memory_space<vmem>>, vector<2x128xf32>
    tpu.vector_store %arg3[%c0_4, %c0_5], %5 {strides = array<i32>} : memref<2x128xf32, #tpu.memory_space<vmem>>, vector<2x128xf32>,
    %c0_6 = arith.constant 0 : index
    %c0_7 = arith.constant 0 : index
    %7 = vector.load %arg3[%c0_6, %c0_7] : memref<2x128xf32, #tpu.memory_space<vmem>>, vector<2x128xf32>
    %c0_8 = arith.constant 0 : index
    %c128 = arith.constant 128 : index
    %8 = vector.load %arg2[%c0_8, %c128] : memref<2x1024xf32, #tpu.memory_space<vmem>>, vector<2x128xf32>
    %9 = arith.addf %7, %8 : vector<2x128xf32>
    %c0_9 = arith.constant 0 : index
    %c0_10 = arith.constant 0 : index
    %10 = vector.load %arg3[%c0_9, %c0_10] : memref<2x128xf32, #tpu.memory_space<vmem>>, vector<2x128xf32>
    tpu.vector_store %arg3[%c0_9, %c0_10], %9 {strides = array<i32>} : memref<2x128xf32, #tpu.memory_space<vmem>>, vector<2x128xf32>,
    %c0_11 = arith.constant 0 : index
    %c0_12 = arith.constant 0 : index
    %11 = vector.load %arg3[%c0_11, %c0_12] : memref<2x128xf32, #tpu.memory_space<vmem>>, vector<2x128xf32>
    %c0_13 = arith.constant 0 : index
    %c256 = arith.constant 256 : index
    %12 = vector.load %arg2[%c0_13, %c256] : memref<2x1024xf32, #tpu.memory_space<vmem>>, vector<2x128xf32>
    %13 = arith.addf %11, %12 : vector<2x128xf32>
    %c0_14 = arith.constant 0 : index
    %c0_15 = arith.constant 0 : index
    %14 = vector.load %arg3[%c0_14, %c0_15] : memref<2x128xf32, #tpu.memory_space<vmem>>, vector<2x128xf32>
    tpu.vector_store %arg3[%c0_14, %c0_15], %13 {strides = array<i32>} : memref<2x128xf32, #tpu.memory_space<vmem>>, vector<2x128xf32>,
    %c0_16 = arith.constant 0 : index
    %c0_17 = arith.constant 0 : index
    %15 = vector.load %arg3[%c0_16, %c0_17] : memref<2x128xf32, #tpu.memory_space<vmem>>, vector<2x128xf32>
    %c0_18 = arith.constant 0 : index
    %c384 = arith.constant 384 : index
    %16 = vector.load %arg2[%c0_18, %c384] : memref<2x1024xf32, #tpu.memory_space<vmem>>, vector<2x128xf32>
    %17 = arith.addf %15, %16 : vector<2x128xf32>
    %c0_19 = arith.constant 0 : index
    %c0_20 = arith.constant 0 : index
    %18 = vector.load %arg3[%c0_19, %c0_20] : memref<2x128xf32, #tpu.memory_space<vmem>>, vector<2x128xf32>
    tpu.vector_store %arg3[%c0_19, %c0_20], %17 {strides = array<i32>} : memref<2x128xf32, #tpu.memory_space<vmem>>, vector<2x128xf32>,
    %c0_21 = arith.constant 0 : index
    %c0_22 = arith.constant 0 : index
    %19 = vector.load %arg3[%c0_21, %c0_22] : memref<2x128xf32, #tpu.memory_space<vmem>>, vector<2x128xf32>
    %c0_23 = arith.constant 0 : index
    %c512 = arith.constant 512 : index
    %20 = vector.load %arg2[%c0_23, %c512] : memref<2x1024xf32, #tpu.memory_space<vmem>>, vector<2x128xf32>
    %21 = arith.addf %19, %20 : vector<2x128xf32>
    %c0_24 = arith.constant 0 : index
    %c0_25 = arith.constant 0 : index
    %22 = vector.load %arg3[%c0_24, %c0_25] : memref<2x128xf32, #tpu.memory_space<vmem>>, vector<2x128xf32>
    tpu.vector_store %arg3[%c0_24, %c0_25], %21 {strides = array<i32>} : memref<2x128xf32, #tpu.memory_space<vmem>>, vector<2x128xf32>,
    %c0_26 = arith.constant 0 : index
    %c0_27 = arith.constant 0 : index
    %23 = vector.load %arg3[%c0_26, %c0_27] : memref<2x128xf32, #tpu.memory_space<vmem>>, vector<2x128xf32>
    %c0_28 = arith.constant 0 : index
    %c640 = arith.constant 640 : index
    %24 = vector.load %arg2[%c0_28, %c640] : memref<2x1024xf32, #tpu.memory_space<vmem>>, vector<2x128xf32>
    %25 = arith.addf %23, %24 : vector<2x128xf32>
    %c0_29 = arith.constant 0 : index
    %c0_30 = arith.constant 0 : index
    %26 = vector.load %arg3[%c0_29, %c0_30] : memref<2x128xf32, #tpu.memory_space<vmem>>, vector<2x128xf32>
    tpu.vector_store %arg3[%c0_29, %c0_30], %25 {strides = array<i32>} : memref<2x128xf32, #tpu.memory_space<vmem>>, vector<2x128xf32>,
    %c0_31 = arith.constant 0 : index
    %c0_32 = arith.constant 0 : index
    %27 = vector.load %arg3[%c0_31, %c0_32] : memref<2x128xf32, #tpu.memory_space<vmem>>, vector<2x128xf32>
    %c0_33 = arith.constant 0 : index
    %c768 = arith.constant 768 : index
    %28 = vector.load %arg2[%c0_33, %c768] : memref<2x1024xf32, #tpu.memory_space<vmem>>, vector<2x128xf32>
    %29 = arith.addf %27, %28 : vector<2x128xf32>
    %c0_34 = arith.constant 0 : index
    %c0_35 = arith.constant 0 : index
    %30 = vector.load %arg3[%c0_34, %c0_35] : memref<2x128xf32, #tpu.memory_space<vmem>>, vector<2x128xf32>
    tpu.vector_store %arg3[%c0_34, %c0_35], %29 {strides = array<i32>} : memref<2x128xf32, #tpu.memory_space<vmem>>, vector<2x128xf32>,
    %c0_36 = arith.constant 0 : index
    %c0_37 = arith.constant 0 : index
    %31 = vector.load %arg3[%c0_36, %c0_37] : memref<2x128xf32, #tpu.memory_space<vmem>>, vector<2x128xf32>
    %c0_38 = arith.constant 0 : index
    %c896 = arith.constant 896 : index
    %32 = vector.load %arg2[%c0_38, %c896] : memref<2x1024xf32, #tpu.memory_space<vmem>>, vector<2x128xf32>
    %33 = arith.addf %31, %32 : vector<2x128xf32>
    %c0_39 = arith.constant 0 : index
    %c0_40 = arith.constant 0 : index
    %34 = vector.load %arg3[%c0_39, %c0_40] : memref<2x128xf32, #tpu.memory_space<vmem>>, vector<2x128xf32>
    tpu.vector_store %arg3[%c0_39, %c0_40], %33 {strides = array<i32>} : memref<2x128xf32, #tpu.memory_space<vmem>>, vector<2x128xf32>,
    return
  }
  func.func @transform_0(%arg0: i32, %arg1: i32) -> (i32, i32) {
    %c0_i32 = arith.constant 0 : i32
    return %arg0, %arg1 : i32, i32
  }
  func.func @transform_1(%arg0: i32, %arg1: i32) -> (i32, i32) {
    %c0_i32 = arith.constant 0 : i32
    %c0_i32_0 = arith.constant 0 : i32
    return %arg0, %c0_i32 : i32, i32
  }
}

</mosaic_0001>

<bundles_post_ra>
// kernel: sum_density.1
= control target key start
LH: loop header
LB: loop body
LE: loop exit
PB: predicated region body
PF: predicated region fallthrough
CT: control target
= control target key end

     0   :  { %v50_v0 = vmov 0.0   ;;  %s136_s1 = inlined_call_operand.vmem [shape: f32[2,128], index: 1, kind: output, shape index: {}]   ;;  %s137_s0 = inlined_call_operand.vmem [shape: f32[2,1024], index: 0, kind: input, shape index: {}]  }
   0x1   :  { %12 = vst [vmem:[%s136_s1] sm:$0x3] %v50_v0  ;;  %v14_v1 = vld [vmem:[%s137_s0] sm:$0x3]  ;;  %v18_v4 = vld [vmem:[%s137_s0 + $0x2] sm:$0x3] }
   0x2   :  { %v22_v7 = vld [vmem:[%s137_s0 + $0x4] sm:$0x3]  ;;  %v26_v10 = vld [vmem:[%s137_s0 + $0x6] sm:$0x3]  ;;  %v30_v13 = vld [vmem:[%s137_s0 + $0x8] sm:$0x3] }
   0x3   :  { %v34_v16 = vld [vmem:[%s137_s0 + $0xa] sm:$0x3]  ;;  %v38_v19 = vld [vmem:[%s137_s0 + $0xc] sm:$0x3]  ;;  %v42_v22 = vld [vmem:[%s137_s0 + $0xe] sm:$0x3] }
   0x8   :  { %v13_v2 = vld [vmem:[%s136_s1] sm:$0x3] }
   0x9   :  { %v15_v3 = vadd.f32 %v14_v1, %v13_v2 }
   0xb   :  { %16 = vst [vmem:[%s136_s1] sm:$0x3] %v15_v3 }
  0x12   :  { %v17_v5 = vld [vmem:[%s136_s1] sm:$0x3] }
  0x13   :  { %v19_v6 = vadd.f32 %v18_v4, %v17_v5 }
  0x15   :  { %20 = vst [vmem:[%s136_s1] sm:$0x3] %v19_v6 }
  0x1c   :  { %v21_v8 = vld [vmem:[%s136_s1] sm:$0x3] }
  0x1d   :  { %v23_v9 = vadd.f32 %v22_v7, %v21_v8 }
  0x1f   :  { %24 = vst [vmem:[%s136_s1] sm:$0x3] %v23_v9 }
  0x26   :  { %v25_v11 = vld [vmem:[%s136_s1] sm:$0x3] }
  0x27   :  { %v27_v12 = vadd.f32 %v26_v10, %v25_v11 }
  0x29   :  { %28 = vst [vmem:[%s136_s1] sm:$0x3] %v27_v12 }
  0x30   :  { %v29_v14 = vld [vmem:[%s136_s1] sm:$0x3] }
  0x31   :  { %v31_v15 = vadd.f32 %v30_v13, %v29_v14 }
  0x33   :  { %32 = vst [vmem:[%s136_s1] sm:$0x3] %v31_v15 }
  0x3a   :  { %v33_v17 = vld [vmem:[%s136_s1] sm:$0x3] }
  0x3b   :  { %v35_v18 = vadd.f32 %v34_v16, %v33_v17 }
  0x3d   :  { %36 = vst [vmem:[%s136_s1] sm:$0x3] %v35_v18 }
  0x44   :  { %v37_v20 = vld [vmem:[%s136_s1] sm:$0x3] }
  0x45   :  { %v39_v21 = vadd.f32 %v38_v19, %v37_v20 }
  0x47   :  { %40 = vst [vmem:[%s136_s1] sm:$0x3] %v39_v21 }
  0x4e   :  { %v41_v23 = vld [vmem:[%s136_s1] sm:$0x3] }
  0x4f   :  { %v43_v24 = vadd.f32 %v42_v22, %v41_v23 }
  0x51   :  { %44 = vst [vmem:[%s136_s1] sm:$0x3] %v43_v24 }

</bundles_post_ra>
